<compile_context>
chip_gen: v7x
topology: tpu7x:2x2x1
jax: 0.10.0
libtpu: 0.0.40
codegen_flags: <defaults>
</compile_context>

<pallas_src>
import functools

import jax
import jax.numpy as jnp
from jax.experimental import pallas as pl
from jax.experimental.pallas import tpu as pltpu


def _round_up(n, m):
    return ((n + m - 1) // m) * m


def _default_compute_dtype():
    """bf16 activations on bf16-native parts (v6e/v7x), f32 elsewhere (v5e-)."""
    try:
        kind = jax.devices()[0].device_kind.lower()
    except Exception:
        return jnp.float32
    if any(v in kind for v in ("v2", "v3", "v4", "v5")):
        return jnp.float32
    return jnp.bfloat16


def _vmem_limit_bytes(tile, h1, h2, compute_dtype):
    act = jnp.dtype(compute_dtype).itemsize
    hmax = max(h1, h2)
    per_col = 8 * 4 * 2          # x^T input block (8 padded sublanes), double-buffered
    per_col += 8 * 4 * 2         # output block, double-buffered
    per_col += 8 * 4             # feats scratch
    per_col += 2 * hmax * 4      # f32 pre-activations
    per_col += 2 * hmax * act    # post-tanh activations
    need = 2 * per_col * tile + (2 << 20)   # 2x headroom for compiler temporaries
    return int(min(max(need, 32 << 20), 40 << 20))


# ----------------------------------------------------------------------------
# Kernel: one batch tile, batch on the lane axis.
#   consts (Hc, 8), f32:
#     col 0 : rows 0-1 = anchor A, rows 2-3 = anchor B, row 4 = b2
#     col 1 : b0 (rows 0:H1)
#     col 2 : b1 (rows 0:H2)
#     cols 4:8 : W0^T (rows 0:H1)
# ----------------------------------------------------------------------------
def _energy_mlp_kernel(xT_ref, consts_ref, w1t_ref, w2r_ref, out_ref, feats_ref,
                       *, h1_dim, h2_dim, compute_dtype):
    xT = xT_ref[...]                                   # (2, T) f32

    a_col = consts_ref[0:2, 0:1]                       # (2, 1) anchor A
    b_col = consts_ref[2:4, 0:1]                       # (2, 1) anchor B
    b2 = consts_ref[4:5, 0:1]                          # (1, 1)
    b0 = consts_ref[0:h1_dim, 1:2]                     # (H1, 1)
    b1 = consts_ref[0:h2_dim, 2:3]                     # (H2, 1)
    w0t = consts_ref[0:h1_dim, 4:8]                    # (H1, 4)

    # exp(-||x - anchor||_2) features, lane-dense (1, T): VPU squares/adds,
    # EUP sqrt/exp.
    dA = xT - a_col
    r2A = dA[0:1, :] * dA[0:1, :] + dA[1:2, :] * dA[1:2, :]
    f1 = jnp.exp(-jnp.sqrt(r2A))                       # (1, T)
    dB = xT - b_col
    r2B = dB[0:1, :] * dB[0:1, :] + dB[1:2, :] * dB[1:2, :]
    f2 = jnp.exp(-jnp.sqrt(r2B))                       # (1, T)

    # Assemble [x; f1; f2] (4, T) in VMEM so layer 0 can run on the MXU
    # (K=4 wastes most of the systolic array, but that slot is otherwise idle).
    feats_ref[0:2, :] = xT
    feats_ref[2:3, :] = f1
    feats_ref[3:4, :] = f2

    # Layer 0 (MXU, f32): h = tanh(W0^T @ feats + b0)
    h = jnp.dot(w0t, feats_ref[...], preferred_element_type=jnp.float32) + b0
    h = jnp.tanh(h.astype(compute_dtype))              # (H1, T)

    # Layer 1 (MXU, bf16 inputs on v6e/v7x, f32 accumulate).
    h = jnp.dot(w1t_ref[...], h, preferred_element_type=jnp.float32) + b1
    h = jnp.tanh(h.astype(compute_dtype))              # (H2, T)

    # Head (MXU, M=1): lane-dense (1, T) f32 store.
    out_ref[...] = jnp.dot(w2r_ref[...], h, preferred_element_type=jnp.float32) + b2


# ----------------------------------------------------------------------------
# Wrapper
# ----------------------------------------------------------------------------
def sequentialmodel_logp_forward(x, A, B, params, tile_n=8192, compute_dtype=None):
    """params = (W0, b0, W1, b1, W2, b2); weights stored (in, out), biases (1, out)."""
    N = x.shape[0]
    W0, b0, W1, b1, W2, b2 = params
    H1 = W0.shape[1]
    H2 = W1.shape[1]
    if compute_dtype is None:
        compute_dtype = _default_compute_dtype()

    # ---- Tile selection: lane-dense (multiple of 128), large by default,
    #      split a single big tile in two so both v7x TensorCores get work.
    n_ceil = _round_up(max(N, 1), 128)
    tile = min(_round_up(max(tile_n, 128), 128), 32768, n_ceil)
    if tile == n_ceil and n_ceil >= 2048:
        tile = _round_up((n_ceil + 1) // 2, 128)
    num_tiles = pl.cdiv(N, tile)
    n_pad = num_tiles * tile

    # ---- Batch on lanes: x^T, padded with a single (fusable) pad op.
    xT = jnp.asarray(x, jnp.float32).T                 # (2, N)
    if n_pad != N:
        xT = jnp.pad(xT, ((0, 0), (0, n_pad - N)))     # pad rows are harmless, sliced off

    # ---- Pack the small constants into one VMEM-resident array.
    Hc = max(H1, H2, 8)
    consts = jnp.zeros((Hc, 8), jnp.float32)
    consts = consts.at[0:2, 0].set(jnp.asarray(A, jnp.float32).reshape(2))
    consts = consts.at[2:4, 0].set(jnp.asarray(B, jnp.float32).reshape(2))
    consts = consts.at[4, 0].set(jnp.asarray(b2, jnp.float32).reshape(()))
    consts = consts.at[:H1, 1].set(jnp.asarray(b0, jnp.float32).reshape(H1))
    consts = consts.at[:H2, 2].set(jnp.asarray(b1, jnp.float32).reshape(H2))
    consts = consts.at[:H1, 4:8].set(jnp.asarray(W0, jnp.float32).T)

    w1t = jnp.asarray(W1, jnp.float32).T.astype(compute_dtype)          # (H2, H1)
    w2r = jnp.asarray(W2, jnp.float32).reshape(1, H2).astype(compute_dtype)  # (1, H2)

    kernel = functools.partial(_energy_mlp_kernel, h1_dim=H1, h2_dim=H2,
                               compute_dtype=compute_dtype)

    out = pl.pallas_call(
        kernel,
        out_shape=jax.ShapeDtypeStruct((1, n_pad), jnp.float32),
        grid=(num_tiles,),
        in_specs=[
            pl.BlockSpec((2, tile), lambda i: (0, i)),     # x^T batch tile
            pl.BlockSpec((Hc, 8), lambda i: (0, 0)),       # packed consts (resident)
            pl.BlockSpec((H2, H1), lambda i: (0, 0)),      # W1^T (resident)
            pl.BlockSpec((1, H2), lambda i: (0, 0)),       # W2 row (resident)
        ],
        out_specs=pl.BlockSpec((1, tile), lambda i: (0, i)),
        scratch_shapes=[pltpu.VMEM((4, tile), jnp.float32)],
        compiler_params=pltpu.CompilerParams(
            dimension_semantics=("parallel",),             # megacore on v7x
            vmem_limit_bytes=_vmem_limit_bytes(tile, H1, H2, compute_dtype)),
    )(xT, consts, w1t, w2r)

    return out[0, :N]                                      # .squeeze() -> (N,)


# ----------------------------------------------------------------------------
# Deterministic parameter construction (Xavier-uniform weights, zero biases)
# ----------------------------------------------------------------------------
def init_params(key, layers):
    """layers = [in_dim, h1, h2, ...]; final head maps layers[-1] -> 1."""
    dims = list(layers) + [1]
    params = []
    for i in range(len(dims) - 1):
        fan_in, fan_out = dims[i], dims[i + 1]
        key, sub = jax.random.split(key)
        bound = jnp.sqrt(6.0 / (fan_in + fan_out))
        W = jax.random.uniform(sub, (fan_in, fan_out), jnp.float32, -bound, bound)
        b = jnp.zeros((1, fan_out), jnp.float32)
        params.extend([W, b])
    return tuple(params)


def _reference_forward(x, A, B, params):
    """Plain-JAX f32 reference mirroring the PyTorch forward."""
    W0, b0, W1, b1, W2, b2 = params
    f1 = jnp.exp(-jnp.linalg.norm(x - A[None, :], axis=1))[:, None]
    f2 = jnp.exp(-jnp.linalg.norm(x - B[None, :], axis=1))[:, None]
    a = jnp.concatenate([x, f1, f2], axis=1)
    a = jnp.tanh(a @ W0 + b0)
    a = jnp.tanh(a @ W1 + b1)
    return (a @ W2 + b2)[:, 0]


if __name__ == "__main__":
    # layers = [4, 32, 32]: 4 = 2 coords + 2 exp-distance features.
    layers = [4, 32, 32]

    key = jax.random.PRNGKey(0)
    kx1, kx2, kx3, kp = jax.random.split(key, 4)

    # Anchor points (stand-ins for the module-level constants A and B).
    A = jnp.array([-0.5, 1.5], jnp.float32)
    B = jnp.array([0.5, 0.0], jnp.float32)
    params = init_params(kp, layers)

    # --- small batch, single tile, exact f32 path ---------------------------
    x1 = jax.random.normal(kx1, (8, 2), jnp.float32)
    o1 = sequentialmodel_logp_forward(x1, A, B, params, compute_dtype=jnp.float32)
    jax.block_until_ready(o1)
    r1 = _reference_forward(x1, A, B, params)
    assert o1.shape == (8,)
    assert jnp.allclose(o1, r1, atol=1e-4, rtol=1e-4)

    # --- non-multiple batch, several grid steps (padding + pipelining) ------
    x2 = jax.random.normal(kx2, (300, 2), jnp.float32)
    o2 = sequentialmodel_logp_forward(x2, A, B, params, tile_n=128,
                                      compute_dtype=jnp.float32)
    jax.block_until_ready(o2)
    r2 = _reference_forward(x2, A, B, params)
    assert o2.shape == (300,)
    assert jnp.allclose(o2, r2, atol=1e-4, rtol=1e-4)

    # --- default path (auto dtype: bf16 on v6e/v7x, f32 on v5e and older;
    #     also exercises the single-tile -> two-tile megacore split) ---------
    x3 = jax.random.normal(kx3, (2048, 2), jnp.float32)
    o3 = sequentialmodel_logp_forward(x3, A, B, params)
    jax.block_until_ready(o3)
    r3 = _reference_forward(x3, A, B, params)
    assert o3.shape == (2048,)
    assert jnp.allclose(o3, r3, atol=5e-2, rtol=5e-2)

    print("KERNEL_OK")
</pallas_src>

<mosaic_0001>
module attributes {stable_mosaic.version = 11 : i64} {
  func.func @_energy_mlp_kernel(%arg0: i32, %arg1: memref<2x128xf32, #tpu.memory_space<vmem>>, %arg2: memref<32x8xf32, #tpu.memory_space<vmem>>, %arg3: memref<32x32xf32, #tpu.memory_space<vmem>>, %arg4: memref<1x32xf32, #tpu.memory_space<vmem>>, %arg5: memref<1x128xf32, #tpu.memory_space<vmem>>, %arg6: memref<4x128xf32, #tpu.memory_space<vmem>>) attributes {dimension_semantics = [#tpu.dimension_semantics<parallel>], iteration_bounds = array<i64: 1>, scalar_prefetch = 0 : i64, scratch_operands = 1 : i64, tpu.core_type = #tpu.core_type<tc>, window_params = [{transform_indices = @transform_0, window_bounds = array<i64: 2, 128>}, {pipeline_mode = #tpu.pipeline_mode<synchronous>, transform_indices = @transform_1, window_bounds = array<i64: 32, 8>}, {pipeline_mode = #tpu.pipeline_mode<synchronous>, transform_indices = @transform_2, window_bounds = array<i64: 32, 32>}, {pipeline_mode = #tpu.pipeline_mode<synchronous>, transform_indices = @transform_3, window_bounds = array<i64: 1, 32>}, {transform_indices = @transform_4, window_bounds = array<i64: 1, 128>}]} {
    %c0 = arith.constant 0 : index
    %c0_0 = arith.constant 0 : index
    %0 = vector.load %arg1[%c0, %c0_0] : memref<2x128xf32, #tpu.memory_space<vmem>>, vector<2x128xf32>
    %c0_1 = arith.constant 0 : index
    %c0_2 = arith.constant 0 : index
    %1 = vector.load %arg2[%c0_1, %c0_2] : memref<32x8xf32, #tpu.memory_space<vmem>>, vector<2x1xf32>
    %c2 = arith.constant 2 : index
    %c0_3 = arith.constant 0 : index
    %2 = vector.load %arg2[%c2, %c0_3] : memref<32x8xf32, #tpu.memory_space<vmem>>, vector<2x1xf32>
    %c4 = arith.constant 4 : index
    %c0_4 = arith.constant 0 : index
    %3 = vector.load %arg2[%c4, %c0_4] : memref<32x8xf32, #tpu.memory_space<vmem>>, vector<1x1xf32>
    %c0_5 = arith.constant 0 : index
    %c1 = arith.constant 1 : index
    %4 = vector.load %arg2[%c0_5, %c1] : memref<32x8xf32, #tpu.memory_space<vmem>>, vector<32x1xf32>
    %c0_6 = arith.constant 0 : index
    %c2_7 = arith.constant 2 : index
    %5 = vector.load %arg2[%c0_6, %c2_7] : memref<32x8xf32, #tpu.memory_space<vmem>>, vector<32x1xf32>
    %c0_8 = arith.constant 0 : index
    %c4_9 = arith.constant 4 : index
    %6 = vector.load %arg2[%c0_8, %c4_9] : memref<32x8xf32, #tpu.memory_space<vmem>>, vector<32x4xf32>
    %7 = vector.broadcast %1 : vector<2x1xf32> to vector<2x128xf32>
    %8 = arith.subf %0, %7 : vector<2x128xf32>
    %9 = vector.extract_strided_slice %8 {offsets = [0, 0], sizes = [1, 128], strides = [1, 1]} : vector<2x128xf32> to vector<1x128xf32>
    %10 = vector.extract_strided_slice %8 {offsets = [0, 0], sizes = [1, 128], strides = [1, 1]} : vector<2x128xf32> to vector<1x128xf32>
    %11 = arith.mulf %9, %10 : vector<1x128xf32>
    %12 = vector.extract_strided_slice %8 {offsets = [1, 0], sizes = [1, 128], strides = [1, 1]} : vector<2x128xf32> to vector<1x128xf32>
    %13 = vector.extract_strided_slice %8 {offsets = [1, 0], sizes = [1, 128], strides = [1, 1]} : vector<2x128xf32> to vector<1x128xf32>
    %14 = arith.mulf %12, %13 : vector<1x128xf32>
    %15 = arith.addf %11, %14 : vector<1x128xf32>
    %16 = math.sqrt %15 : vector<1x128xf32>
    %cst = arith.constant 0.000000e+00 : f32
    %17 = vector.broadcast %cst : f32 to vector<1x128xf32>
    %18 = arith.subf %17, %16 : vector<1x128xf32>
    %19 = math.exp %18 : vector<1x128xf32>
    %20 = vector.broadcast %2 : vector<2x1xf32> to vector<2x128xf32>
    %21 = arith.subf %0, %20 : vector<2x128xf32>
    %22 = vector.extract_strided_slice %21 {offsets = [0, 0], sizes = [1, 128], strides = [1, 1]} : vector<2x128xf32> to vector<1x128xf32>
    %23 = vector.extract_strided_slice %21 {offsets = [0, 0], sizes = [1, 128], strides = [1, 1]} : vector<2x128xf32> to vector<1x128xf32>
    %24 = arith.mulf %22, %23 : vector<1x128xf32>
    %25 = vector.extract_strided_slice %21 {offsets = [1, 0], sizes = [1, 128], strides = [1, 1]} : vector<2x128xf32> to vector<1x128xf32>
    %26 = vector.extract_strided_slice %21 {offsets = [1, 0], sizes = [1, 128], strides = [1, 1]} : vector<2x128xf32> to vector<1x128xf32>
    %27 = arith.mulf %25, %26 : vector<1x128xf32>
    %28 = arith.addf %24, %27 : vector<1x128xf32>
    %29 = math.sqrt %28 : vector<1x128xf32>
    %cst_10 = arith.constant 0.000000e+00 : f32
    %30 = vector.broadcast %cst_10 : f32 to vector<1x128xf32>
    %31 = arith.subf %30, %29 : vector<1x128xf32>
    %32 = math.exp %31 : vector<1x128xf32>
    %c0_11 = arith.constant 0 : index
    %c0_12 = arith.constant 0 : index
    %33 = vector.load %arg6[%c0_11, %c0_12] : memref<4x128xf32, #tpu.memory_space<vmem>>, vector<2x128xf32>
    tpu.vector_store %arg6[%c0_11, %c0_12], %0 {strides = array<i32>} : memref<4x128xf32, #tpu.memory_space<vmem>>, vector<2x128xf32>,
    %c2_13 = arith.constant 2 : index
    %c0_14 = arith.constant 0 : index
    %34 = vector.load %arg6[%c2_13, %c0_14] : memref<4x128xf32, #tpu.memory_space<vmem>>, vector<1x128xf32>
    tpu.vector_store %arg6[%c2_13, %c0_14], %19 {strides = array<i32>} : memref<4x128xf32, #tpu.memory_space<vmem>>, vector<1x128xf32>,
    %c3 = arith.constant 3 : index
    %c0_15 = arith.constant 0 : index
    %35 = vector.load %arg6[%c3, %c0_15] : memref<4x128xf32, #tpu.memory_space<vmem>>, vector<1x128xf32>
    tpu.vector_store %arg6[%c3, %c0_15], %32 {strides = array<i32>} : memref<4x128xf32, #tpu.memory_space<vmem>>, vector<1x128xf32>,
    %c0_16 = arith.constant 0 : index
    %c0_17 = arith.constant 0 : index
    %36 = vector.load %arg6[%c0_16, %c0_17] : memref<4x128xf32, #tpu.memory_space<vmem>>, vector<4x128xf32>
    %cst_18 = arith.constant dense<0.000000e+00> : vector<32x128xf32>
    %37 = tpu.matmul %6, %36, %cst_18 {dimension_numbers = #tpu.dot_dimension_numbers<[1], [0], [0], [1], [0, 0, 1, 1], [], []>} : vector<32x4xf32>, vector<4x128xf32>, vector<32x128xf32> -> vector<32x128xf32>
    %38 = vector.broadcast %4 : vector<32x1xf32> to vector<32x128xf32>
    %39 = arith.addf %37, %38 : vector<32x128xf32>
    %40 = math.tanh %39 : vector<32x128xf32>
    %c0_19 = arith.constant 0 : index
    %c0_20 = arith.constant 0 : index
    %41 = vector.load %arg3[%c0_19, %c0_20] : memref<32x32xf32, #tpu.memory_space<vmem>>, vector<32x32xf32>
    %cst_21 = arith.constant dense<0.000000e+00> : vector<32x128xf32>
    %42 = tpu.matmul %41, %40, %cst_21 {dimension_numbers = #tpu.dot_dimension_numbers<[1], [0], [0], [1], [0, 0, 1, 1], [], []>} : vector<32x32xf32>, vector<32x128xf32>, vector<32x128xf32> -> vector<32x128xf32>
    %43 = vector.broadcast %5 : vector<32x1xf32> to vector<32x128xf32>
    %44 = arith.addf %42, %43 : vector<32x128xf32>
    %45 = math.tanh %44 : vector<32x128xf32>
    %c0_22 = arith.constant 0 : index
    %c0_23 = arith.constant 0 : index
    %46 = vector.load %arg4[%c0_22, %c0_23] : memref<1x32xf32, #tpu.memory_space<vmem>>, vector<1x32xf32>
    %cst_24 = arith.constant dense<0.000000e+00> : vector<1x128xf32>
    %47 = tpu.matmul %46, %45, %cst_24 {dimension_numbers = #tpu.dot_dimension_numbers<[1], [0], [0], [1], [0, 0, 1, 1], [], []>} : vector<1x32xf32>, vector<32x128xf32>, vector<1x128xf32> -> vector<1x128xf32>
    %48 = vector.broadcast %3 : vector<1x1xf32> to vector<1x128xf32>
    %49 = arith.addf %47, %48 : vector<1x128xf32>
    %c0_25 = arith.constant 0 : index
    %c0_26 = arith.constant 0 : index
    %50 = vector.load %arg5[%c0_25, %c0_26] : memref<1x128xf32, #tpu.memory_space<vmem>>, vector<1x128xf32>
    tpu.vector_store %arg5[%c0_25, %c0_26], %49 {strides = array<i32>} : memref<1x128xf32, #tpu.memory_space<vmem>>, vector<1x128xf32>,
    return
  }
  func.func @transform_0(%arg0: i32) -> (i32, i32) {
    %c0_i32 = arith.constant 0 : i32
    %c0_i32_0 = arith.constant 0 : i32
    return %c0_i32, %arg0 : i32, i32
  }
  func.func @transform_1(%arg0: i32) -> (i32, i32) {
    %c0_i32 = arith.constant 0 : i32
    %c0_i32_0 = arith.constant 0 : i32
    %c0_i32_1 = arith.constant 0 : i32
    return %c0_i32, %c0_i32_0 : i32, i32
  }
  func.func @transform_2(%arg0: i32) -> (i32, i32) {
    %c0_i32 = arith.constant 0 : i32
    %c0_i32_0 = arith.constant 0 : i32
    %c0_i32_1 = arith.constant 0 : i32
    return %c0_i32, %c0_i32_0 : i32, i32
  }
  func.func @transform_3(%arg0: i32) -> (i32, i32) {
    %c0_i32 = arith.constant 0 : i32
    %c0_i32_0 = arith.constant 0 : i32
    %c0_i32_1 = arith.constant 0 : i32
    return %c0_i32, %c0_i32_0 : i32, i32
  }
  func.func @transform_4(%arg0: i32) -> (i32, i32) {
    %c0_i32 = arith.constant 0 : i32
    %c0_i32_0 = arith.constant 0 : i32
    return %c0_i32, %arg0 : i32, i32
  }
}

</mosaic_0001>

<bundles_post_ra>
// kernel: tpu_custom_call.1
= control target key start
LH: loop header
LB: loop body
LE: loop exit
PB: predicated region body
PF: predicated region fallthrough
CT: control target
= control target key end

     0   :  { %v555_v2 = vmov 0   ;;  %s556_s19 = smov 124   ;;  %s670_s0 = inlined_call_operand.vmem [shape: f32[2,128], index: 0, kind: input, shape index: {}]   ;;  %s671_s1 = inlined_call_operand.vmem [shape: f32[32,8], index: 1, kind: input, shape index: {}]   ;;  %s672_s2 = inlined_call_operand.vmem [shape: f32[32,32], index: 2, kind: input, shape index: {}]   ;;  %s673_s3 = inlined_call_operand.vmem [shape: f32[1,32], index: 3, kind: input, shape index: {}]   ;;  %s674_s4 = inlined_call_operand.hbm [shape: f32[1,128], index: 4, kind: output, shape index: {}]  }
   0x1   :  { %v19_v0 = vld [vmem:[%s671_s1] sm:$0x3]  ;;  %501 = vset.pattern.permute.xlu0 %v555_v2 }
   0x2   :  { %v594_v1 = vld [vmem:[%s671_s1] sm:$0xff]  ;;  %28 = vperm.xlu0 %501, %v19_v0  }
   0x3   :  { %92 = vrot.lane.b32.xlu1 %v594_v1, %s556_s19  ;;  %v18_v3 = vld [vmem:[%s670_s0] sm:$0x3] }
   0x4   :  { %9 = vsyncpa [#allocation4], 0  ;;  %v20_v4 = vld [vmem:[%s671_s1 + $0x2] sm:$0x3]  ;;  %v607_v5 = vld [vmem:[%s671_s1 + $0x8] sm:$0xff]  ;;  %v557_v8 = vmov 1  }
   0x5   :  { %68 = vst [vmem:[#allocation2] sm:$0x3] %v18_v3  ;;  %v613_v6 = vld [vmem:[%s671_s1 + $0x10] sm:$0xff]  ;;  %v618_v7 = vld [vmem:[%s671_s1 + $0x18] sm:$0xff]  ;;  %503 = vset.pattern.permute.xlu1 %v557_v8  ;;  %vm100_vm0 = vcmask 31744   ;;  %vm109_vm5 = vcmask 1043456  }
   0x6   :  { %49 = vperm.xlu0 %501, %v20_v4   ;;  %v202_v40 = vld [vmem:[%s672_s2] sm:$0xff]  ;;  %vm222_vm6 = vcmask 261120   ;;  %v558_v41 = vmov 2   ;;  %v203_v60 = vld [vmem:[%s672_s2 + $0x8] sm:$0xff]  ;;  %v204_v61 = vld [vmem:[%s672_s2 + $0x10] sm:$0xff]  ;;  %v559_v63 = vmov 0.0|0.0  }
   0x7   :  { %94 = vrot.lane.b32.xlu1 %v607_v5, %s556_s19  ;;  %462 = vmatprep.mubr.msk.f32.mxu1 %vm222_vm6, %v202_v40  ;;  %v205_v62 = vld [vmem:[%s672_s2 + $0x18] sm:$0xff]  ;;  %vm560_vm7 = vmmov 0   ;;  %v561_v0 = vmov 0.0   ;;  %s562_s13 = smov [#allocation3]  }
   0x8   :  { %s410_s14 = sshll.u32 %s562_s13, 4  ;;  %s411_s14 = int_to_ptr.vmem [resolvable:$true] %s410_s14 }
   0x9   :  { %s531_s15 = scalar_lea.vmem %s411_s14, 16  ;;  %s535_s16 = scalar_lea.vmem %s411_s14, 32 }
   0xa   :  { %96 = vrot.lane.b32.xlu0 %v613_v6, %s556_s19  ;;  %p532_p0 = scmp.ne.s32.totalorder %s411_s14, %s531_s15  ;;  %p536_p1 = scmp.lt.s32.totalorder %s411_s14, %s411_s14 }
   0xb   :  { %98 = vrot.lane.b32.xlu1 %v618_v7, %s556_s19  ;;  %502 = vset.pattern.permute.xlu0 %v557_v8  ;;  %p537_p2 = scmp.lt.s32.totalorder %s535_s16, %s531_s15 }
   0xd   :  { %p538_p3 = por %p537_p2, %p536_p1 }
   0xe   :  { %74 = vperm.xlu0 %502, %v594_v1  }
   0xf   :  { %79 = vperm.xlu1 %503, %v607_v5   ;;  %p539_p4 = pnand %p538_p3, %p532_p0 }
  0x12   :  { %89 = vperm.xlu0 %502, %v618_v7  }
  0x13   :  { %84 = vperm.xlu1 %503, %v613_v6  }
  0x16   :  { %505 = vset.pattern.permute.xlu0 %v558_v41 }
  0x17   :  { %504 = vset.pattern.permute.xlu1 %v558_v41  ;;  %211 = vperm.xlu0 %505, %v607_v5  }
  0x18   :  { %207 = vperm.xlu1 %504, %v594_v1   ;;  %v21_v1 = vld [vmem:[%s671_s1 + $0x4] sm:$0x1] }
  0x1b   :  { %506 = vset.pattern.permute.xlu0 %v555_v2 }
  0x1c   :  { %215 = vperm.xlu1 %504, %v613_v6   ;;  %327 = vperm.xlu0 %506, %v21_v1  }
  0x20   :  { %219 = vperm.xlu1 %504, %v618_v7  }
  0x75   :  { %v93_v9 = vpop.permute.xlu1 %92 }
  0x76   :  { %448 = vmatprep.mubr.msk.f32.mxu0 %vm100_vm0, %v93_v9 }
  0x79   :  { %v95_v36 = vpop.permute.xlu1 %94 }
  0x7d   :  { %v99_v39 = vpop.permute.xlu1 %98 }
  0x81   :  { %v29_v10 = vpop.permute.xlu0 %28 }
  0x82   :  { %v31_v11 = vsub.f32 %v18_v3, %v29_v10 }
  0x84   :  { %v32_v12 = vmul.f32 %v31_v11, %v31_v11 }
  0x85   :  { %v50_v13 = vpop.permute.xlu0 %49 }
  0x86   :  { %v34_v14 = vrot.slane %v32_v12, 1  ;;  %v52_v15 = vsub.f32 %v18_v3, %v50_v13 }
  0x88   :  { %v36_v16 = vadd.f32 %v34_v14, %v32_v12  ;;  %v53_v17 = vmul.f32 %v52_v15, %v52_v15 }
  0x89   :  { %v97_v38 = vpop.permute.xlu0 %96 }
  0x8a   :  { %507 = vrsqrt.f32 %v36_v16  ;;  %v55_v18 = vrot.slane %v53_v17, 1  ;;  %vm39_vm1 = vcmp.eq.f32.partialorder %v36_v16, inf  ;;  %v42_v22 = vand.u32 2147483648, %v36_v16 }
  0x8b   :  { %vm41_vm2 = vcmp.eq.f32.partialorder %v36_v16, 0.0 }
  0x8c   :  { %v57_v19 = vadd.f32 %v55_v18, %v53_v17 }
  0x8d   :  { %v75_v42 = vpop.permute.xlu0 %74 }
  0x8e   :  { %509 = vrsqrt.f32 %v57_v19  ;;  %vm60_vm3 = vcmp.eq.f32.partialorder %v57_v19, inf  ;;  %v63_v29 = vand.u32 2147483648, %v57_v19  ;;  %vm62_vm4 = vcmp.eq.f32.partialorder %v57_v19, 0.0  ;;  %v80_v43 = vpop.permute.xlu1 %79 }
  0x91   :  { %v90_v48 = vpop.permute.xlu0 %89 }
  0x92   :  { %v85_v50 = vpop.permute.xlu1 %84 }
  0x94   :  { %v508_v20 = vpop.eup %507 }
  0x95   :  { %v38_v21 = vmul.f32 %v508_v20, %v36_v16  ;;  %v324_v20 = vld [vmem:[%s673_s3] sm:$0x1] }
  0x96   :  { %v212_v4 = vpop.permute.xlu0 %211 }
  0x97   :  { %v40_v23 = vsel %vm39_vm1, %v36_v16, %v38_v21  ;;  %v208_v2 = vpop.permute.xlu1 %207 }
  0x98   :  { %v43_v24 = vsel %vm41_vm2, %v42_v22, %v40_v23  ;;  %v510_v25 = vpop.eup %509 }
  0x99   :  { %v44_v26 = vsub.f32 0.0, %v43_v24  ;;  %v59_v27 = vmul.f32 %v510_v25, %v57_v19 }
  0x9b   :  { %v45_v28 = vmul.f32 1.442695, %v44_v26  ;;  %v61_v30 = vsel %vm60_vm3, %v57_v19, %v59_v27  ;;  %v216_v3 = vpop.permute.xlu1 %215  ;;  %v328_v21 = vpop.permute.xlu0 %327 }
  0x9c   :  { %v64_v31 = vsel %vm62_vm4, %v63_v29, %v61_v30 }
  0x9d   :  { %511 = vpow2.f32 %v45_v28  ;;  %v65_v32 = vsub.f32 0.0, %v64_v31 }
  0x9f   :  { %v66_v33 = vmul.f32 1.442695, %v65_v32  ;;  %v220_v9 = vpop.permute.xlu1 %219 }
  0xa1   :  { %513 = vpow2.f32 %v66_v33 }
  0xa7   :  { %v512_v34 = vpop.eup %511 }
  0xa8   :  { %69 = vst [vmem:[#allocation2 + $0x2] sm:$0x1] %v512_v34 }
  0xab   :  { %v514_v35 = vpop.eup %513 }
  0xac   :  { %70 = vst [vmem:[#allocation2 + $0x3] sm:$0x1] %v514_v35 }
  0xb3   :  { %v71_v37 = vld [vmem:[#allocation2] sm:$0xf] }
  0xb4   :  { %446 = vmatprep.subr.msk.mxu0 %vm109_vm5, %v71_v37 }
  0xb5   :  { %447 = vmatpush3.msk.msra.mxu0 %vm109_vm5, %v71_v37 }
  0xb6   :  { %449 = vmatmul.mubr.msk.f32.vlgmr.msra.gmra.mrb[0].mxu0 %vm100_vm0, %v95_v36  ;;  %487 = vmatprep.subr.bf16.mxu0 %v559_v63 }
  0xb7   :  { %451 = vmatprep.mubr.msk.f32.mxu0 %vm100_vm0, %v97_v38 }
  0xba   :  { %452 = vmatmul.mubr.msk.f32.gmra.mrb[2].mxu0 %vm100_vm0, %v99_v39 }
  0xbb   :  { %476 = vmatprep.mubr.msk.f32.mxu0 %vm560_vm7, %v561_v0 }
 0x189   :  { %v450_v44 = vpop.f32.mrb[0].mxu0 }
 0x18a   :  { %v185_v45 = vadd.f32 %v450_v44, %v80_v43  ;;  %v179_v46 = vpop.f32.mrb[1].mxu0 }
 0x18b   :  { %v180_v47 = vadd.f32 %v179_v46, %v75_v42 }
 0x18c   :  { %515 = vtanh.f32 %v185_v45 }
 0x18d   :  { %517 = vtanh.f32 %v180_v47  ;;  %v453_v49 = vpop.f32.mrb[2].mxu0 }
 0x18e   :  { %v195_v51 = vadd.f32 %v453_v49, %v90_v48  ;;  %v189_v52 = vpop.f32.mrb[3].mxu0 }
 0x18f   :  { %v190_v53 = vadd.f32 %v189_v52, %v85_v50 }
 0x190   :  { %519 = vtanh.f32 %v195_v51 }
 0x191   :  { %521 = vtanh.f32 %v190_v53 }
 0x196   :  { %v516_v54 = vpop.eup %515 }
 0x197   :  { %v518_v55 = vpop.eup %517 }
 0x198   :  { %v479_v56 = vpack.c.bf16 %v516_v54, %v518_v55 }
 0x19a   :  { %v520_v57 = vpop.eup %519  ;;  %480 = vmatprep.subr.bf16.mxu1 %v479_v56 }
 0x19b   :  { %v522_v58 = vpop.eup %521  ;;  %482 = vmatpush3.bf16.msra.mxu1 %v479_v56 }
 0x19c   :  { %v483_v59 = vpack.c.bf16 %v520_v57, %v522_v58 }
 0x19e   :  { %484 = vmatprep.subr.bf16.mxu1 %v483_v59 }
 0x19f   :  { %486 = vmatpush3.bf16.msra.mxu1 %v483_v59 }
 0x1a2   :  { %463 = vmatmul.mubr.msk.f32.vlgmr.msra.gmra.mrb[0].mxu1 %vm222_vm6, %v203_v60 }
 0x1a3   :  { %465 = vmatprep.mubr.msk.f32.mxu1 %vm222_vm6, %v204_v61 }
 0x1a6   :  { %466 = vmatmul.mubr.msk.f32.gmra.mrb[2].mxu1 %vm222_vm6, %v205_v62 }
 0x275   :  { %v464_v5 = vpop.f32.mrb[0].mxu1 }
 0x276   :  { %v307_v6 = vadd.f32 %v464_v5, %v212_v4  ;;  %v301_v7 = vpop.f32.mrb[1].mxu1 }
 0x277   :  { %v302_v8 = vadd.f32 %v301_v7, %v208_v2 }
 0x278   :  { %523 = vtanh.f32 %v307_v6 }
 0x279   :  { %525 = vtanh.f32 %v302_v8  ;;  %v467_v10 = vpop.f32.mrb[2].mxu1 }
 0x27a   :  { %v317_v11 = vadd.f32 %v467_v10, %v220_v9  ;;  %v311_v12 = vpop.f32.mrb[3].mxu1 }
 0x27b   :  { %v312_v13 = vadd.f32 %v311_v12, %v216_v3 }
 0x27c   :  { %527 = vtanh.f32 %v317_v11 }
 0x27d   :  { %529 = vtanh.f32 %v312_v13 }
 0x282   :  { %v524_v14 = vpop.eup %523 }
 0x283   :  { %v526_v15 = vpop.eup %525 }
 0x284   :  { %v488_v16 = vpack.c.bf16 %v524_v14, %v526_v15 }
 0x286   :  { %v528_v17 = vpop.eup %527  ;;  %489 = vmatpush3.bf16.msra.mxu0 %v488_v16 }
 0x287   :  { %v530_v18 = vpop.eup %529  ;;  %490 = vmatprep.subr.bf16.mxu0 %v559_v63 }
 0x288   :  { %v491_v19 = vpack.c.bf16 %v528_v17, %v530_v18 }
 0x28a   :  { %492 = vmatpush3.bf16.msra.mxu0 %v491_v19 }
 0x28d   :  { %477 = vmatmul.mubr.msk.f32.vlgmr.msra.gmra.mrb[4].mxu0 %vm222_vm6, %v324_v20 }
 0x360   :  { %v399_v22 = vpop.f32.mrb[4].mxu0 }
 0x361   :  { %v400_v23 = vadd.f32 %v399_v22, %v328_v21  ;;  %v478_v24 = vpop.f32.mrb[5].mxu0 }
 0x363   :  { %403 = vst [vmem:[#allocation3] sm:$0x1] %v400_v23 }
 0x364   :  { %542 = shalt.err (!%p539_p4)
}
 0x365   :  { %s543_s18 = scalar_lea.hbm %s674_s4, 16 }
 0x366   :  { %p544_p5 = scmp.ne.s32.totalorder %s674_s4, %s543_s18  ;;  %p547_p6 = scmp.lt.u32.totalorder %s543_s18, %s674_s4 }
 0x368   :  { %p549_p7 = pnand %p547_p6, %p544_p5 }
 0x36a   :  { %552 = shalt.err (!%p549_p7)
}
 0x36b   :  { %413 = dma.vmem_to_hbm [thread:$0]  %s411_s14, 16, %s674_s4, [#allocation4]  }
 0x36c   :  { %553 = dma.done.wait [#allocation4], 16  }
 0x36d   :  { %554 = vsyncadd [#allocation4], 4294967280 }
 0x36e   :  { %417 = vsyncpa [#allocation4], 1 }

</bundles_post_ra>
